<compile_context>
chip_gen: v7x
topology: tpu7x:2x2x1
jax: 0.10.0
libtpu: 0.0.40
codegen_flags: <defaults>
</compile_context>

<pallas_src>
import math

import jax
import jax.numpy as jnp
from jax.experimental import pallas as pl
from jax.experimental.pallas import tpu as pltpu

ID = [7, 6, 5, 4, 3, 2, 1, 0, 7, 6, 5, 4, 3, 2, 1, 0]

I_IDX = 3
J_IDX = 10
LOGIC_FN = jnp.logical_and  # jnp analogue of the eval'd f_str


# ----------------------- per-generation tiling policy ------------------------
def _vmem_capacity_bytes():
    try:
        info = pltpu.get_tpu_info()
        for attr in ("vmem_capacity_bytes", "vmem_bytes", "vmem_size_bytes"):
            v = getattr(info, attr, None)
            if v:
                return int(v)
    except Exception:
        pass
    return 64 * 1024 * 1024  # unknown -> assume smallest (v7x per-TC) VMEM


def _tile_policy():
    """Return (target int32 elems per x tile, vmem_limit_bytes)."""
    cap = _vmem_capacity_bytes()
    if cap >= 100 * 1024 * 1024:
        # v5e / v6e: 128 MiB VMEM.  16 MiB x tile; double-buffered
        # x(2x16) + w(2x16) + bool out(2x4) ~= 72 MiB < 96 MiB limit.
        return 4 * 1024 * 1024, 96 * 1024 * 1024
    # v7x: 64 MiB per TensorCore.  8 MiB x tile; ~36 MiB < 48 MiB limit.
    return 2 * 1024 * 1024, 48 * 1024 * 1024


def _choose_lane(n):
    """Largest lane-dense last dim (multiple of 128) dividing n, else 128."""
    for lane in (1024, 512, 256, 128):
        if n % lane == 0:
            return lane
    return 128  # rare: requires a one-time zero-pad of the flattened arrays


# ------------------------------- the kernel ----------------------------------
def _make_kernel(bit_x, bit_w, logic_fn):
    def kernel(a_ref, b_ref, o_ref):
        x_bit = (a_ref[...] >> bit_x) & 1   # (TR, LANE) int32
        w_bit = (b_ref[...] >> bit_w) & 1   # (TR, LANE) int32 (reused per batch)
        o_ref[...] = logic_fn(x_bit, w_bit).astype(o_ref.dtype)
    return kernel


def _pallas_logic(x3, w2, bit_x, bit_w, logic_fn, out_dtype, tile_rows, vmem_limit):
    B, rows, lane = x3.shape
    n_row_tiles = pl.cdiv(rows, tile_rows)
    return pl.pallas_call(
        _make_kernel(bit_x, bit_w, logic_fn),
        out_shape=jax.ShapeDtypeStruct((B, rows, lane), out_dtype),
        grid_spec=pltpu.PrefetchScalarGridSpec(
            num_scalar_prefetch=0,
            # Row tiles OUTER, batch INNER: w's block index depends only on the
            # outer axis, so Pallas skips w's DMA across inner batch steps.
            grid=(n_row_tiles, B),
            in_specs=[
                pl.BlockSpec((None, tile_rows, lane), lambda t, b: (b, t, 0)),
                pl.BlockSpec((tile_rows, lane), lambda t, b: (t, 0)),
            ],
            out_specs=pl.BlockSpec((None, tile_rows, lane), lambda t, b: (b, t, 0)),
        ),
        compiler_params=pltpu.CompilerParams(
            # No reduction axis; both grid axes are independent, so both are
            # parallel (lets the v7x megacore shard on row tiles or batch).
            dimension_semantics=("parallel", "parallel"),
            vmem_limit_bytes=vmem_limit,
        ),
    )(x3, w2)


# ------------------- one-time bool-output capability probe -------------------
_BOOL_OUT_OK = None


def _bool_output_supported():
    """Eager, cached probe: can this Mosaic build store bool kernel outputs?"""
    global _BOOL_OUT_OK
    if _BOOL_OUT_OK is None:
        def probe(a_ref, o_ref):
            o_ref[...] = ((a_ref[...] >> 1) & 1) != 0
        try:
            out = pl.pallas_call(
                probe, out_shape=jax.ShapeDtypeStruct((8, 128), jnp.bool_),
            )(jnp.zeros((8, 128), jnp.int32))
            jax.block_until_ready(out)
            _BOOL_OUT_OK = True
        except Exception:
            _BOOL_OUT_OK = False
    return _BOOL_OUT_OK


# --------------------------------- wrapper ------------------------------------
def logic_op(x, w, i=I_IDX, j=J_IDX, logic_fn=LOGIC_FN):
    """Pallas implementation of LogicOP.forward for the i < 8 <= j branch."""
    assert i < 8 <= j, "this wrapper implements the i < 8 <= j branch"
    # TODO(synk): the other LogicOP __init__ branches (both bits from x, both
    # from w, unary f_str, constant-ones op) and general torch-style
    # broadcasting reuse the same kernel with different operand/bit wiring;
    # only the configured branch is wired up here.
    assert x.shape[1:] == w.shape, "w must broadcast against x over batch"
    bit_x = ID[i]
    bit_w = ID[j]

    B = x.shape[0]
    n = math.prod(x.shape[1:])

    target_elems, vmem_limit = _tile_policy()
    lane = _choose_lane(n)

    # Lane-dense flattening.  Padding only when n is not a multiple of 128.
    n_pad = -(-n // lane) * lane
    xf = x.reshape(B, n)
    wf = w.reshape(n)
    if n_pad != n:
        # TODO(synk): this extra HBM pass only triggers when prod(x.shape[1:])
        # is not a multiple of 128; all other shapes take the zero-copy path.
        xf = jnp.pad(xf, ((0, 0), (0, n_pad - n)))
        wf = jnp.pad(wf, (0, n_pad - n))
    rows = n_pad // lane
    x3 = xf.reshape(B, rows, lane)
    w2 = wf.reshape(rows, lane)

    # Row-tile size: multiple of 8 sublanes, ~target_elems int32 per x tile.
    # Partial final row tiles are handled by Pallas (no host-side padding).
    target_rows = max(8, (target_elems // lane) // 8 * 8)
    tile_rows = rows if rows <= target_rows else target_rows
    if B == 1 and rows >= 16:
        # Keep >= 2 row tiles so both v7x TensorCores get work when batch == 1.
        tile_rows = min(tile_rows, max(8, (-(-rows // 2) // 8) * 8))

    out_dtype = jnp.bool_ if _bool_output_supported() else jnp.int8
    out3 = _pallas_logic(x3, w2, bit_x, bit_w, logic_fn, out_dtype,
                         tile_rows, vmem_limit)
    out_flat = out3.reshape(B, n_pad)
    if out_dtype != jnp.bool_:
        # Fallback path only: one extra elementwise pass over the output.
        out_flat = out_flat != 0
    if n_pad != n:
        out_flat = out_flat[:, :n]
    return out_flat.reshape(x.shape)


if __name__ == "__main__":
    key = jax.random.PRNGKey(0)
    kx, kw = jax.random.split(key)
    B, C, H, W = 2, 4, 16, 16
    x = jax.random.randint(kx, (B, C, H, W), 0, 256, dtype=jnp.int32)
    w = jax.random.randint(kw, (C, H, W), 0, 256, dtype=jnp.int32)

    out = jax.block_until_ready(logic_op(x, w))

    # pure-JAX reference of the same LogicOP branch
    ref = jnp.logical_and((x >> ID[I_IDX]) & 1, (w >> ID[J_IDX]) & 1)
    assert out.shape == ref.shape
    assert out.dtype == jnp.bool_
    assert bool(jnp.all(out == ref))
    print("KERNEL_OK")
</pallas_src>

<mosaic_0001>
module attributes {stable_mosaic.version = 11 : i64} {
  func.func @probe(%arg0: memref<8x128xi32, #tpu.memory_space<vmem>>, %arg1: memref<8x128xi32, #tpu.memory_space<vmem>>) attributes {dimension_semantics = [], scalar_prefetch = 0 : i64, scratch_operands = 0 : i64, tpu.core_type = #tpu.core_type<tc>} {
    %c0 = arith.constant 0 : index
    %c0_0 = arith.constant 0 : index
    %0 = vector.load %arg0[%c0, %c0_0] : memref<8x128xi32, #tpu.memory_space<vmem>>, vector<8x128xi32>
    %c1_i32 = arith.constant 1 : i32
    %1 = vector.broadcast %c1_i32 : i32 to vector<8x128xi32>
    %2 = arith.shrsi %0, %1 : vector<8x128xi32>
    %c1_i32_1 = arith.constant 1 : i32
    %3 = vector.broadcast %c1_i32_1 : i32 to vector<8x128xi32>
    %4 = arith.andi %2, %3 : vector<8x128xi32>
    %c0_i32 = arith.constant 0 : i32
    %5 = vector.broadcast %c0_i32 : i32 to vector<8x128xi32>
    %6 = arith.cmpi ne, %4, %5 : vector<8x128xi32>
    %c0_2 = arith.constant 0 : index
    %c0_3 = arith.constant 0 : index
    %7 = vector.load %arg1[%c0_2, %c0_3] : memref<8x128xi32, #tpu.memory_space<vmem>>, vector<8x128xi32>
    %8 = arith.extui %6 : vector<8x128xi1> to vector<8x128xi32>
    %cst = arith.constant dense<0> : vector<8x128xi32>
    %9 = arith.cmpi ne, %7, %cst : vector<8x128xi32>
    tpu.vector_store %arg1[%c0_2, %c0_3], %8 {strides = array<i32>} : memref<8x128xi32, #tpu.memory_space<vmem>>, vector<8x128xi32>,
    return
  }
}

module attributes {stable_mosaic.version = 11 : i64} {
  func.func @kernel(%arg0: i32, %arg1: i32, %arg2: memref<1x1x1024xi32, #tpu.memory_space<vmem>>, %arg3: memref<1x1024xi32, #tpu.memory_space<vmem>>, %arg4: memref<1x1x1024xi8, #tpu.memory_space<vmem>>) attributes {dimension_semantics = [#tpu.dimension_semantics<parallel>, #tpu.dimension_semantics<parallel>], iteration_bounds = array<i64: 1, 2>, scalar_prefetch = 0 : i64, scratch_operands = 0 : i64, tpu.core_type = #tpu.core_type<tc>, window_params = [{transform_indices = @transform_0, window_bounds = array<i64: 1, 1, 1024>}, {transform_indices = @transform_1, window_bounds = array<i64: 1, 1024>}, {transform_indices = @transform_2, window_bounds = array<i64: 1, 1, 1024>}]} {
    %c0 = arith.constant 0 : index
    %c0_0 = arith.constant 0 : index
    %c0_1 = arith.constant 0 : index
    %0 = vector.load %arg2[%c0, %c0_0, %c0_1] : memref<1x1x1024xi32, #tpu.memory_space<vmem>>, vector<1x1x1024xi32>
    %1 = vector.shape_cast %0 : vector<1x1x1024xi32> to vector<1x1024xi32>
    %c4_i32 = arith.constant 4 : i32
    %2 = vector.broadcast %c4_i32 : i32 to vector<1x1024xi32>
    %3 = arith.shrsi %1, %2 : vector<1x1024xi32>
    %c1_i32 = arith.constant 1 : i32
    %4 = vector.broadcast %c1_i32 : i32 to vector<1x1024xi32>
    %5 = arith.andi %3, %4 : vector<1x1024xi32>
    %c0_2 = arith.constant 0 : index
    %c0_3 = arith.constant 0 : index
    %6 = vector.load %arg3[%c0_2, %c0_3] : memref<1x1024xi32, #tpu.memory_space<vmem>>, vector<1x1024xi32>
    %c5_i32 = arith.constant 5 : i32
    %7 = vector.broadcast %c5_i32 : i32 to vector<1x1024xi32>
    %8 = arith.shrsi %6, %7 : vector<1x1024xi32>
    %c1_i32_4 = arith.constant 1 : i32
    %9 = vector.broadcast %c1_i32_4 : i32 to vector<1x1024xi32>
    %10 = arith.andi %8, %9 : vector<1x1024xi32>
    %c0_i32 = arith.constant 0 : i32
    %11 = vector.broadcast %c0_i32 : i32 to vector<1x1024xi32>
    %12 = arith.cmpi ne, %5, %11 : vector<1x1024xi32>
    %c0_i32_5 = arith.constant 0 : i32
    %13 = vector.broadcast %c0_i32_5 : i32 to vector<1x1024xi32>
    %14 = arith.cmpi ne, %10, %13 : vector<1x1024xi32>
    %15 = arith.andi %12, %14 : vector<1x1024xi1>
    %16 = arith.extui %15 : vector<1x1024xi1> to vector<1x1024xi8>
    %c0_6 = arith.constant 0 : index
    %c0_7 = arith.constant 0 : index
    %c0_8 = arith.constant 0 : index
    %17 = vector.load %arg4[%c0_6, %c0_7, %c0_8] : memref<1x1x1024xi8, #tpu.memory_space<vmem>>, vector<1x1x1024xi8>
    %18 = vector.shape_cast %17 : vector<1x1x1024xi8> to vector<1x1024xi8>
    %19 = vector.shape_cast %16 : vector<1x1024xi8> to vector<1x1x1024xi8>
    tpu.vector_store %arg4[%c0_6, %c0_7, %c0_8], %19 {strides = array<i32>} : memref<1x1x1024xi8, #tpu.memory_space<vmem>>, vector<1x1x1024xi8>,
    return
  }
  func.func @transform_0(%arg0: i32, %arg1: i32) -> (i32, i32, i32) {
    %c0_i32 = arith.constant 0 : i32
    %c0_i32_0 = arith.constant 0 : i32
    return %arg1, %arg0, %c0_i32 : i32, i32, i32
  }
  func.func @transform_1(%arg0: i32, %arg1: i32) -> (i32, i32) {
    %c0_i32 = arith.constant 0 : i32
    %c0_i32_0 = arith.constant 0 : i32
    return %arg0, %c0_i32 : i32, i32
  }
  func.func @transform_2(%arg0: i32, %arg1: i32) -> (i32, i32, i32) {
    %c0_i32 = arith.constant 0 : i32
    %c0_i32_0 = arith.constant 0 : i32
    return %arg1, %arg0, %c0_i32 : i32, i32, i32
  }
}

</mosaic_0001>

<bundles_post_ra>
// kernel: tpu_custom_call.1
= control target key start
LH: loop header
LB: loop body
LE: loop exit
PB: predicated region body
PF: predicated region fallthrough
CT: control target
= control target key end

     0   :  { %6 = vsyncpa [#allocation3], 0  ;;  %s57_s6 = smov [#allocation2]   ;;  %s84_s0 = inlined_call_operand.hbm [shape: s32[8,128], index: 0, kind: input, shape index: {}]   ;;  %s85_s1 = inlined_call_operand.vmem [shape: s32[8,128], index: 1, kind: output, shape index: {}]  }
   0x1   :  { %s13_s7 = sshll.u32 %s57_s6, 4  ;;  %s33_s10 = scalar_lea.hbm %s84_s0, 128  ;;  %s14_s7 = int_to_ptr.vmem [resolvable:$true] %s13_s7 }
   0x2   :  { %p34_p0 = scmp.ne.s32.totalorder %s84_s0, %s33_s10  ;;  %p37_p1 = scmp.lt.u32.totalorder %s33_s10, %s84_s0 }
   0x4   :  { %p39_p2 = pnand %p37_p1, %p34_p0 }
   0x6   :  { %42 = shalt.err (!%p39_p2)
}
   0x7   :  { %s43_s15 = scalar_lea.vmem %s14_s7, 128  ;;  %p48_p4 = scmp.lt.s32.totalorder %s14_s7, %s14_s7 }
   0x8   :  { %p44_p3 = scmp.ne.s32.totalorder %s14_s7, %s43_s15  ;;  %p49_p5 = scmp.lt.s32.totalorder %s43_s15, %s43_s15 }
   0xa   :  { %p50_p6 = por %p49_p5, %p48_p4 }
   0xc   :  { %p51_p7 = pnand %p50_p6, %p44_p3 }
   0xe   :  { %54 = shalt.err (!%p51_p7)
}
   0xf   :  { %16 = dma.hbm_to_vmem [thread:$0]  %s84_s0, 128, %s14_s7, [#allocation3]  }
  0x10   :  { %55 = dma.done.wait [#allocation3], 128  }
  0x11   :  { %56 = vsyncadd [#allocation3], 4294967168  ;;  %v20_v0 = vld [vmem:[#allocation2] sm:$0xff]  ;;  %v58_v3 = vmov 0  }
  0x12   :  { %v21_v1 = vshra.s32 %v20_v0, 1 }
  0x14   :  { %v22_v2 = vand.u32 1, %v21_v1 }
  0x16   :  { %vm23_vm0 = vcmp.ne.s32.totalorder %v22_v2, 0 }
  0x17   :  { %v24_v4 = vsel %vm23_vm0, 1, %v58_v3 }
  0x18   :  { %25 = vst [vmem:[%s85_s1] sm:$0xff] %v24_v4 }
  0x19   :  { %30 = vsyncpa [#allocation3], 1 }

// kernel: tpu_custom_call.1
= control target key start
LH: loop header
LB: loop body
LE: loop exit
PB: predicated region body
PF: predicated region fallthrough
CT: control target
= control target key end

     0   :  { %7 = vsyncpa [#allocation3], 0  ;;  %s979_s0 = inlined_call_operand.hbm [shape: s32[2,1,1024], index: 0, kind: input, shape index: {}]   ;;  %s980_s1 = inlined_call_operand.hbm [shape: s32[1,1024], index: 1, kind: input, shape index: {}]   ;;  %s981_s2 = inlined_call_operand.vmem [shape: s8[2,1,1024], index: 2, kind: output, shape index: {}]  }
   0x1   :  { %9 = vsyncpa [#allocation3 + $0x1], 0 }
   0x2   :  { %10 = vsyncpa [#allocation5], 0  ;;  %s736_s9 = smov 0   ;;  %s738_s10 = smov 0  }
   0x3   :  { %s740_s11 = smov 0   ;;  %s742_s12 = smov 0  }
   0x4   :  { %s744_s13 = smov 0   ;;  %s746_s14 = smov 0  }
   0x5 LB: > { %s512_s15 = sadd.s32 4294967295, %s711_s14   ;;  %p50_p0 = scmp.ne.s32.totalorder %s695_s10, %s691_s9  ;;  %s711_s14 = sphi %s746_s14, %s16_s14   ;;  %s707_s13 = sphi %s744_s13, %s1012_s13   ;;  %s703_s12 = sphi %s742_s12, %s1011_s12   ;;  %s699_s11 = sphi %s740_s11, %s1010_s11   ;;  %s695_s10 = sphi %s738_s10, %s1009_s10   ;;  %s691_s9 = sphi %s736_s9, %s1008_s9  }
   0x6   : > { %p766_p1 = scmp.eq.s32.totalorder %s512_s15, 0  ;;  %p514_p2 = scmp.ge.s32.totalorder %s711_s14, 1 }
   0x7   : > { %p115_p3 = scmp.lt.s32.totalorder %s711_s14, 3  ;;  %s713_s19 = smov [#allocation4]  }
   0x8   : > { %s986_s16 = scalar_select %p766_p1, 1, 0 }
   0x9   : > { %p774_p4 = por %p766_p1, %p50_p0  ;;  %p778_p5 = pnand %p514_p2, %p115_p3 }
   0xa   : > { %s131_s20 = sshll.u32 %s713_s19, 4  ;;  %s25_s22 = sadd.s32 1, %s707_s13  ;;  %s132_s20 = int_to_ptr.vmem [resolvable:$true] %s131_s20 }
   0xb   : > { %s987_s17 = scalar_select %p774_p4, 1, 0 }
   0xc   : > { %s988_s18 = scalar_select %p778_p5, 1, 0 }
   0xd   : > { %p533_p6 = pneg %p778_p5  ;;  %s37_s23 = sadd.s32 1, %s699_s11 }
   0xe   : > { %p792_p8 = scmp.ge.s32.totalorder %s25_s22, 2  ;;  %s599_s27 = scalar_lea.hbm %s980_s1, 128 }
   0xf   : > { %p786_p7 = pnand %p533_p6, %p766_p1  ;;  %p600_p9 = scmp.ne.s32.totalorder %s980_s1, %s599_s27 }
  0x10   : > { %s990_s24 = scalar_select %p792_p8, 1, 0 }
  0x11   : > { %p601_p10 = pneg %p786_p7  ;;  %p606_p13 = scmp.lt.u32.totalorder %s599_s27, %s980_s1 }
  0x13   : > { %p602_p11 = pnand %p601_p10, %p600_p9 }
  0x15   : > { %p603_p12 = pneg %p602_p11 }
  0x17   : > { %p608_p0 = pnand %p606_p13, %p603_p12 }
  0x19   : > { %611 = shalt.err (!%p608_p0)
}
  0x1a   : > { %s612_s4 = scalar_lea.vmem %s132_s20, 128  ;;  %p620_p1 = scmp.lt.s32.totalorder %s132_s20, %s132_s20 }
  0x1b   : > { %p613_p2 = scmp.ne.s32.totalorder %s132_s20, %s612_s4  ;;  %p621_p4 = scmp.lt.s32.totalorder %s612_s4, %s612_s4 }
  0x1d   : > { %p615_p3 = pnand %p613_p2, %p601_p10  ;;  %p622_p5 = por %p621_p4, %p620_p1 }
  0x1f   : > { %p616_p6 = pneg %p615_p3 }
  0x21   : > { %p623_p8 = pnand %p622_p5, %p616_p6 }
  0x23   : > { %626 = shalt.err (!%p623_p8)
}
  0x24   : > { %536 = dma.hbm_to_vmem [thread:$0]  (!%p786_p7), %s980_s1, 128, %s132_s20, [#allocation5]  }
  0x25   : > { %p991_p9 = scmp.ne.s32.totalorder %s990_s24, 0  ;;  %p44_p1 = scmp.ne.s32.totalorder %s699_s11, %s695_s10 }
  0x26   : > { %p45_p4 = scmp.eq.s32.totalorder %s711_s14, 0  ;;  %p542_p5 = scmp.lt.s32.totalorder %s711_s14, 2 }
  0x27   : > { %s1014_s22 = smov (%p991_p9, %s25_s22), 0  ;;  %s142_s8 = sand.u32 1, %s699_s11  }
  0x28   : > { %s32_s7 = ssub.s32 %s707_s13, %s1014_s22  ;;  %p46_p10 = por %p45_p4, %p44_p1 }
  0x29   : > { %p35_p8 = scmp.eq.s32.totalorder %s32_s7, 0  ;;  %s526_s9 = sshll.u32 %s707_s13, 7 }
  0x2a   : > { %s517_s19 = sshll.u32 %s142_s8, 3  ;;  %s832_s20 = scalar_lea.hbm %s979_s0, %s526_s9 }
  0x2b   : > { %s827_s15 = scalar_select %p35_p8, %s699_s11, %s37_s23  }
  0x2c   : > { %s146_s24 = scalar_lea.vmem [#allocation2], %s517_s19  ;;  %p834_p7 = pnand %p542_p5, %p46_p10 }
  0x2d   : > { %s156_s26 = sshll.u32 %s146_s24, 4  ;;  %s143_s23 = scalar_lea.sflag [#allocation3], %s142_s8  ;;  %s838_s26 = int_to_ptr.vmem [resolvable:$true] %s156_s26 }
  0x2e   : > { %s627_s28 = scalar_lea.hbm %s832_s20, 128  ;;  %p629_p12 = pneg %p834_p7 }
  0x2f   : > { %p628_p11 = scmp.ne.s32.totalorder %s832_s20, %s627_s28  ;;  %s632_s3 = scalar_lea.hbm %s979_s0, 256 }
  0x30   : > { %p633_p2 = scmp.lt.u32.totalorder %s832_s20, %s979_s0  ;;  %p634_p3 = scmp.lt.u32.totalorder %s632_s3, %s627_s28 }
  0x31   : > { %p630_p13 = pnand %p629_p12, %p628_p11  ;;  %p636_p9 = scmp.lt.u32.totalorder %s627_s28, %s832_s20 }
  0x32   : > { %p635_p6 = por %p634_p3, %p633_p2 }
  0x33   : > { %p631_p0 = pneg %p630_p13 }
  0x34   : > { %p637_p1 = por %p636_p9, %p635_p6 }
  0x36   : > { %p638_p4 = pnand %p637_p1, %p631_p0 }
  0x38   : > { %641 = shalt.err (!%p638_p4)
}
  0x39   : > { %s642_s6 = scalar_lea.vmem %s838_s26, 128  ;;  %s714_s7 = smov [#allocation2]  }
  0x3a   : > { %p643_p5 = scmp.ne.s32.totalorder %s838_s26, %s642_s6  ;;  %s647_s8 = sshll.u32 %s714_s7, 4  ;;  %s648_s8 = int_to_ptr.vmem [resolvable:$false] %s647_s8 }
  0x3b   : > { %s649_s9 = scalar_lea.vmem %s648_s8, 256  ;;  %p650_p11 = scmp.lt.s32.totalorder %s838_s26, %s648_s8 }
  0x3c   : > { %p645_p8 = pnand %p643_p5, %p629_p12  ;;  %p651_p13 = scmp.lt.s32.totalorder %s649_s9, %s642_s6 }
  0x3e   : > { %p646_p10 = pneg %p645_p8  ;;  %p652_p2 = por %p651_p13, %p650_p11 }
  0x40   : > { %p653_p3 = pnand %p652_p2, %p646_p10 }
  0x42   : > { %656 = shalt.err (!%p653_p3)
}
  0x43   : > { %540 = dma.hbm_to_vmem [thread:$0]  (!%p834_p7), %s832_s20, 128, %s838_s26, %s143_s23  }
  0x44   : > { %p993_p0 = scmp.ne.s32.totalorder %s988_s18, 0 }
  0x45   : > { %s167_s19 = sand.u32 (!%p993_p0), 1, %s695_s10   ;;  %p994_p12 = scmp.ne.s32.totalorder (!%p993_p0), %s987_s17, 0 }
  0x46   : > { %165 = sbr.rel (%p993_p0) target bundleno = 125 (0x7d), region = 28  ;;  %s521_s21 = sshll.u32 (!%p993_p0), %s167_s19, 3 }
  0x47   : > { %s168_s25 = scalar_lea.sflag (!%p993_p0), [#allocation3], %s167_s19  ;;  %s171_s24 = scalar_lea.vmem (!%p993_p0), [#allocation2], %s521_s21 }
  0x4d   : > { %682 = dma.done.wait (%p994_p12), %s168_s25, 128  }
  0x4e   : > { %684 = vsyncadd (%p994_p12), %s168_s25, 4294967168  ;;  %p995_p6 = scmp.ne.s32.totalorder %s986_s16, 0 }
  0x50   : > { %686 = dma.done.wait (%p995_p6), [#allocation5], 128  }
  0x51   : > { %688 = vsyncadd (%p995_p6), [#allocation5], 4294967168  ;;  %v222_v0 = vlaneseq  ;;  %v715_v1 = vmov 286326784   ;;  %v716_v3 = vmov 858989090   ;;  %v209_v10 = vld [vmem:[%s171_s24] sm:$0xff] }
  0x52   : > { %v220_v2 = vunpack.c.l.s4 %v715_v1  ;;  %v227_v4 = vunpack.c.l.s4 %v716_v3  ;;  %v717_v5 = vmov 1431651396   ;;  %v718_v7 = vmov 2004313702   ;;  %v212_v11 = vld [vmem:[#allocation4] sm:$0xff]  ;;  %p199_p7 = scmp.lt.s32.totalorder %s703_s12, 1 }
  0x53   : > { %v234_v6 = vunpack.c.l.s4 %v717_v5  ;;  %v241_v8 = vunpack.c.l.s4 %v718_v7  ;;  %v223_v9 = vshrl.u32 %v222_v0, 7  ;;  %v210_v16 = vshra.s32 %v209_v10, 4 }
  0x54   : > { %v221_v12 = vunpack.c.0.s8 %v220_v2  ;;  %v228_v13 = vunpack.c.0.s8 %v227_v4  ;;  %v213_v17 = vshra.s32 %v212_v11, 5  ;;  %v719_v24 = vmov 1966171168   ;;  %s1016_s12 = smov (!%p199_p7, %s703_s12), 1 }
  0x55   : > { %v235_v14 = vunpack.c.0.s8 %v234_v6  ;;  %v242_v15 = vunpack.c.0.s8 %v241_v8  ;;  %v211_v18 = vand.u32 1, %v210_v16  ;;  %v262_v25 = vunpack.c.l.s4 %v719_v24  ;;  %s523_s16 = sshll.u32 %s1016_s12, 3 }
  0x56   : > { %v214_v19 = vand.u32 1, %v213_v17  ;;  %v224_v20 = vsub.s32 %v221_v12, %v223_v9  ;;  %v231_v21 = vsub.s32 %v228_v13, %v223_v9  ;;  %vm374_vm3 = vcmask 1040384   ;;  %s206_s20 = scalar_lea.vmem %s981_s2, %s523_s16 }
  0x57   : > { %v238_v22 = vsub.s32 %v235_v14, %v223_v9  ;;  %v245_v23 = vsub.s32 %v242_v15, %v223_v9  ;;  %vm215_vm0 = vcmp.ne.s32.totalorder %v211_v18, 0  ;;  %vm375_vm4 = vsmask.f32 0  ;;  %v405_v17 = vld [vmem:[%s206_s20] sm:$0xff] }
  0x58   : > { %vm216_vm1 = vcmp.ne.s32.totalorder %v214_v19, 0  ;;  %v720_v26 = vmov 0   ;;  %vm377_vm5 = vcmask 1041409   ;;  %vm378_vm6 = vsmask.f32 1024  ;;  %vm877_vm7 = vmand %vm374_vm3, %vm375_vm4 }
  0x59   : > { %vm217_vm2 = vmand %vm215_vm0, %vm216_vm1  ;;  %v263_v32 = vunpack.c.0.s8 %v262_v25  ;;  %vm381_vm8 = vcmask 1042434   ;;  %vm382_vm9 = vsmask.f32 2048  ;;  %vm385_vm1 = vcmask 1043459  }
  0x5a   : > { %v218_v27 = vsel %vm217_vm2, 1, %v720_v26  ;;  %vm881_vm14 = vmand %vm377_vm5, %vm378_vm6  ;;  %vm386_vm2 = vsmask.f32 3072  ;;  %vm389_vm6 = vcmask 1044484  }
  0x5b   : > { %v225_v28 = vrot.slane %v218_v27, %v224_v20  ;;  %v232_v29 = vrot.slane %v218_v27, %v231_v21  ;;  %v239_v30 = vrot.slane %v218_v27, %v238_v22  ;;  %v246_v31 = vrot.slane %v218_v27, %v245_v23  ;;  %vm380_vm15 = vmor %vm881_vm14, %vm877_vm7 }
  0x5c   : > { %v893_v42 = vsub.s32 %v263_v32, %v223_v9  ;;  %vm383_vm0 = vmand %vm381_vm8, %vm382_vm9  ;;  %vm390_vm7 = vsmask.f32 4096  ;;  %vm393_vm9 = vcmask 1045509   ;;  %vm398_vm14 = vsmask.f32 6144 }
  0x5d   : > { %vm247_vm10 = vcmp.ne.s32.totalorder %v225_v28, 0  ;;  %vm248_vm11 = vcmp.ne.s32.totalorder %v232_v29, 0  ;;  %vm249_vm12 = vcmp.ne.s32.totalorder %v239_v30, 0  ;;  %vm250_vm13 = vcmp.ne.s32.totalorder %v246_v31, 0  ;;  %vm898_vm4 = vmor %vm383_vm0, %vm380_vm15 }
  0x5e   : > { %v251_v35 = vsel %vm247_vm10, 1, %v720_v26  ;;  %v252_v36 = vsel %vm248_vm11, 1, %v720_v26  ;;  %v253_v37 = vsel %vm249_vm12, 1, %v720_v26  ;;  %v254_v38 = vsel %vm250_vm13, 1, %v720_v26  ;;  %vm903_vm5 = vmand %vm385_vm1, %vm386_vm2 }
  0x5f   : > { %v255_v39 = vpack.c.b16 %v252_v36, %v251_v35  ;;  %v256_v40 = vpack.c.b16 %v254_v38, %v253_v37  ;;  %vm388_vm8 = vmor %vm903_vm5, %vm898_vm4  ;;  %vm394_vm12 = vsmask.f32 5120  ;;  %vm397_vm13 = vcmask 1046534  }
  0x60   : > { %vm391_vm10 = vmand %vm389_vm6, %vm390_vm7 }
  0x61   : > { %v257_v41 = vpack.c.b8 %v256_v40, %v255_v39  ;;  %vm924_vm2 = vmor %vm391_vm10, %vm388_vm8  ;;  %vm402_vm10 = vsmask.f32 7168 }
  0x62   : > { %vm399_vm8 = vmand %vm397_vm13, %vm398_vm14 }
  0x63   : > { %vm258_vm3 = vnez %v257_v41 }
  0x64   : > { %v259_v43 = vsel %vm258_vm3, 16843009, %v720_v26 }
  0x65   : > { %v260_v45 = vcombine.high %v259_v43, %v259_v43  ;;  %v267_v46 = vrot.slane %v259_v43, %v893_v42 }
  0x67   : > { %v274_v48 = vrot.slane %v260_v45, %v893_v42  ;;  %v275_v49 = vcombine.high %v267_v46, %v267_v46  ;;  %v283_v50 = vrot.slane %v267_v46, %v893_v42 }
  0x69   : > { %v276_v51 = vcombine.high %v274_v48, %v274_v48  ;;  %v290_v52 = vrot.slane %v274_v48, %v893_v42  ;;  %v297_v53 = vrot.slane %v275_v49, %v893_v42  ;;  %v305_v54 = vcombine.high %v283_v50, %v283_v50 }
  0x6a   : > { %vm309_vm11 = vnez %v283_v50 }
  0x6b   : > { %v304_v55 = vrot.slane %v276_v51, %v893_v42  ;;  %v306_v56 = vcombine.high %v290_v52, %v290_v52  ;;  %v307_v57 = vcombine.high %v297_v53, %v297_v53  ;;  %vm310_vm15 = vnez %v297_v53 }
  0x6c   : > { %vm311_vm0 = vnez %v305_v54  ;;  %vm313_vm1 = vnez %v290_v52  ;;  %v317_v58 = vsel %vm309_vm11, 16843009, %v720_v26  ;;  %v318_v59 = vsel %vm310_vm15, 16843009, %v720_v26  ;;  %vm935_vm11 = vmand %vm393_vm9, %vm394_vm12 }
  0x6d   : > { %v308_v61 = vcombine.high %v304_v55, %v304_v55  ;;  %vm312_vm3 = vnez %v307_v57  ;;  %vm314_vm6 = vnez %v304_v55  ;;  %vm315_vm7 = vnez %v306_v56  ;;  %vm396_vm5 = vmor %vm935_vm11, %vm924_vm2 }
  0x6e   : > { %v319_v63 = vsel %vm311_vm0, 16843009, %v720_v26  ;;  %v320_v0 = vsel %vm312_vm3, 16843009, %v720_v26  ;;  %v321_v1 = vsel %vm313_vm1, 16843009, %v720_v26  ;;  %v325_v2 = vcombine.low %v317_v58, %v318_v59  ;;  %vm400_vm12 = vmor %vm399_vm8, %vm396_vm5 }
  0x6f   : > { %vm316_vm4 = vnez %v308_v61  ;;  %v322_v3 = vsel %vm314_vm6, 16843009, %v720_v26  ;;  %v323_v4 = vsel %vm315_vm7, 16843009, %v720_v26  ;;  %v326_v5 = vcombine.low %v319_v63, %v320_v0 }
  0x70   : > { %v324_v6 = vsel %vm316_vm4, 16843009, %v720_v26  ;;  %v327_v7 = vcombine.low %v321_v1, %v322_v3  ;;  %v335_v8 = vrot.slane %v325_v2, %v893_v42  ;;  %vm401_vm9 = vcmask 1047559  }
  0x71   : > { %v328_v9 = vcombine.low %v323_v4, %v324_v6  ;;  %v342_v10 = vrot.slane %v326_v5, %v893_v42  ;;  %vm403_vm15 = vmand %vm401_vm9, %vm402_vm10 }
  0x72   : > { %v349_v11 = vrot.slane %v327_v7, %v893_v42  ;;  %vm404_vm13 = vmor %vm403_vm15, %vm400_vm12 }
  0x73   : > { %v356_v12 = vrot.slane %v328_v9, %v893_v42  ;;  %v357_v13 = vcombine.low %v335_v8, %v342_v10 }
  0x75   : > { %v358_v14 = vcombine.low %v349_v11, %v356_v12  ;;  %v365_v15 = vrot.slane %v357_v13, %v893_v42 }
  0x77   : > { %v372_v16 = vrot.slane %v358_v14, %v893_v42 }
  0x79   : > { %v373_v18 = vcombine.low %v365_v15, %v372_v16 }
  0x7b   : > { %v406_v19 = vsel %vm404_vm13, %v373_v18, %v405_v17 }
  0x7c   : > { %407 = vst [vmem:[%s206_s20] sm:$0xff] %v406_v19 }
  0x7d PF: > { %s16_s14 = sadd.s32 1, %s711_s14   ;;  %s1008_s9 = smov %s695_s10 }
  0x7e   : > { %p13_p9 = scmp.ge.s32.totalorder %s16_s14, 4   ;;  %s1009_s10 = smov %s699_s11 }
  0x7f   : > { %s1010_s11 = smov %s827_s15  ;;  %s1011_s12 = smov %s707_s13 }
  0x80   : > { %s1012_s13 = smov %s1014_s22  ;;  %15 = sbr.rel (!%p13_p9) target bundleno = 5 (0x5), region = 73 }
  0x87   :  { %435 = vsyncpa [#allocation3], 1 }
  0x88   :  { %437 = vsyncpa [#allocation3 + $0x1], 1 }
  0x89   :  { %438 = vsyncpa [#allocation5], 1 }

</bundles_post_ra>
